<compile_context>
chip_gen: v5e
topology: v5e:2x2
jax: 0.10.0
libtpu: 0.0.40
codegen_flags: <defaults>
</compile_context>

<pallas_src>
import functools

import jax
import jax.numpy as jnp
from jax.experimental import pallas as pl
from jax.experimental.pallas import tpu as pltpu


def _mfvi_sample_kernel(*refs, n_layers):
    """One grid step == one MC sample.

    refs = [x, (wmu, wlv, eps_w, bmu, blv, eps_b) * n_layers, out]

    Per-step block layouts:
      x      : (B_pad, In0)      f32, shared by all samples (constant index_map)
      wmu/wlv: (In_l, Out_l)     f32, shared
      eps_w  : (1, In_l, Out_l)  bf16, this sample's slice
      bmu/blv: (1, Out_l)        f32, shared
      eps_b  : (1, 1, Out_l)     bf16, this sample's slice
      out    : (1, B_pad, Out_last) f32
    """
    x_ref = refs[0]
    o_ref = refs[-1]

    h = x_ref[...].astype(jnp.float32)                       # (B_pad, In0)

    for l in range(n_layers):
        (wmu_ref, wlv_ref, epsw_ref,
         bmu_ref, blv_ref, epsb_ref) = refs[1 + 6 * l: 1 + 6 * (l + 1)]

        wmu = wmu_ref[...]                                   # (In, Out)
        sigma_w = jnp.exp(0.5 * wlv_ref[...])                # EUP slot, (In, Out)
        sigma_b = jnp.exp(0.5 * blv_ref[...])                # (1, Out)

        eps_w = epsw_ref[0].astype(jnp.float32)              # (In, Out)
        eps_b = epsb_ref[0].astype(jnp.float32)              # (1, Out)

        w = wmu + eps_w * sigma_w                            # reparameterized W
        b = bmu_ref[...] + eps_b * sigma_b                   # reparameterized b

        # bf16 MXU operands, f32 accumulation.
        y = jnp.dot(h.astype(jnp.bfloat16), w.astype(jnp.bfloat16),
                    preferred_element_type=jnp.float32) + b  # (B_pad, Out)

        h = y if l == n_layers - 1 else jnp.maximum(y, 0.0)

    o_ref[0] = h.astype(o_ref.dtype)


def _vmem_limit_bytes():
    """~75% of physical VMEM, capped at 100 MiB (≈48 MiB on v7x, ≈96 MiB on
    v5e/v6e), leaving headroom for the double-buffered pipelined inputs."""
    cap = 128 << 20
    try:
        info = pltpu.get_tpu_info()
        cap = int(getattr(info, "vmem_capacity_bytes", cap))
    except Exception:
        pass
    return int(min(100 << 20, (cap * 3) // 4))


def mfvi_forward(params, x, eps_list, samples):
    """Fused MFVI forward. x: (B, In0) -> (S, B, Out_last)."""
    n_layers = len(params)
    S = samples
    B, in0 = x.shape
    out_last = params[-1]["weight_mu"].shape[1]

    # Pad batch to a multiple of 16 sublanes (bf16 vreg packing on the MXU M
    # dim); padded rows are zeros and are sliced off after the call.
    B_pad = ((B + 15) // 16) * 16
    x_p = x.astype(jnp.float32)
    if B_pad != B:
        x_p = jnp.pad(x_p, ((0, B_pad - B), (0, 0)))

    inputs = [x_p]
    in_specs = [pl.BlockSpec((B_pad, in0), lambda s: (0, 0))]
    for p, (eps_w, eps_b) in zip(params, eps_list):
        din, dout = p["weight_mu"].shape
        inputs += [p["weight_mu"], p["weight_logvar"], eps_w,
                   p["bias_mu"], p["bias_logvar"], eps_b]
        in_specs += [
            pl.BlockSpec((din, dout), lambda s: (0, 0)),      # weight_mu (shared)
            pl.BlockSpec((din, dout), lambda s: (0, 0)),      # weight_logvar
            pl.BlockSpec((1, din, dout), lambda s: (s, 0, 0)),  # eps_w[s]
            pl.BlockSpec((1, dout), lambda s: (0, 0)),        # bias_mu
            pl.BlockSpec((1, dout), lambda s: (0, 0)),        # bias_logvar
            pl.BlockSpec((1, 1, dout), lambda s: (s, 0, 0)),  # eps_b[s]
        ]

    kernel = functools.partial(_mfvi_sample_kernel, n_layers=n_layers)
    out = pl.pallas_call(
        kernel,
        out_shape=jax.ShapeDtypeStruct((S, B_pad, out_last), jnp.float32),
        grid=(S,),
        in_specs=in_specs,
        out_specs=pl.BlockSpec((1, B_pad, out_last), lambda s: (s, 0, 0)),
        compiler_params=pltpu.CompilerParams(
            dimension_semantics=("parallel",),
            vmem_limit_bytes=_vmem_limit_bytes()),
    )(*inputs)

    return out[:, :B, :] if B_pad != B else out


def init_mfvi_params(key, input_size, hidden_sizes, output_size):
    """Deterministic parameter init matching MFVI_NN.__init__ layer shapes."""
    sizes = [input_size] + list(hidden_sizes) + [output_size]
    params = []
    for i in range(len(sizes) - 1):
        key, k_w, k_b = jax.random.split(key, 3)
        din, dout = sizes[i], sizes[i + 1]
        params.append(dict(
            weight_mu=0.1 * jax.random.normal(k_w, (din, dout), jnp.float32),
            weight_logvar=jnp.full((din, dout), -6.0, jnp.float32),
            bias_mu=0.1 * jax.random.normal(k_b, (1, dout), jnp.float32),
            bias_logvar=jnp.full((1, dout), -6.0, jnp.float32),
        ))
    return params


def mfvi_forward_ref(params, x, eps_list, samples):
    """Pure-JAX reference (same eps values, same bf16 MXU operand rounding)."""
    S = samples
    n_layers = len(params)
    h = jnp.broadcast_to(x[None].astype(jnp.float32), (S,) + x.shape)
    for i, p in enumerate(params):
        eps_w, eps_b = eps_list[i]
        w = (p["weight_mu"][None]
             + eps_w.astype(jnp.float32) * jnp.exp(0.5 * p["weight_logvar"])[None])
        b = (p["bias_mu"][None]
             + eps_b.astype(jnp.float32) * jnp.exp(0.5 * p["bias_logvar"])[None])
        y = jnp.einsum("sbi,sio->sbo",
                       h.astype(jnp.bfloat16), w.astype(jnp.bfloat16),
                       preferred_element_type=jnp.float32) + b
        h = y if i == n_layers - 1 else jnp.maximum(y, 0.0)
    return h


if __name__ == "__main__":
    # Small shapes consistent with the module's MLP forward.
    input_size, hidden_sizes, output_size = 16, [32], 8
    batch, samples = 2, 4

    key = jax.random.PRNGKey(0)
    key, k_x = jax.random.split(key)
    x = jax.random.normal(k_x, (batch, input_size), jnp.float32)

    params = init_mfvi_params(jax.random.PRNGKey(0), input_size, hidden_sizes,
                              output_size)

    # Deterministic standard-normal noise for the reparameterization trick,
    # stored in bf16; both kernel and reference consume the same bf16-rounded
    # values, accumulation is f32 in both.
    sizes = [input_size] + hidden_sizes + [output_size]
    eps_list = []
    for i in range(len(sizes) - 1):
        key, k_ew, k_eb = jax.random.split(key, 3)
        eps_list.append((
            jax.random.normal(k_ew, (samples, sizes[i], sizes[i + 1]),
                              jnp.bfloat16),
            jax.random.normal(k_eb, (samples, 1, sizes[i + 1]), jnp.bfloat16),
        ))

    out = mfvi_forward(params, x, eps_list, samples)
    out = jax.block_until_ready(out)

    ref = mfvi_forward_ref(params, x, eps_list, samples)
    assert out.shape == (samples, batch, output_size)
    assert jnp.allclose(out, ref, atol=2e-3, rtol=2e-3)

    print("KERNEL_OK")
</pallas_src>

<mosaic_0001>
module attributes {stable_mosaic.version = 11 : i64} {
  func.func @_mfvi_sample_kernel(%arg0: i32, %arg1: memref<16x16xf32, #tpu.memory_space<vmem>>, %arg2: memref<16x32xf32, #tpu.memory_space<vmem>>, %arg3: memref<16x32xf32, #tpu.memory_space<vmem>>, %arg4: memref<1x16x32xbf16, #tpu.memory_space<vmem>>, %arg5: memref<1x32xf32, #tpu.memory_space<vmem>>, %arg6: memref<1x32xf32, #tpu.memory_space<vmem>>, %arg7: memref<1x1x32xbf16, #tpu.memory_space<vmem>>, %arg8: memref<32x8xf32, #tpu.memory_space<vmem>>, %arg9: memref<32x8xf32, #tpu.memory_space<vmem>>, %arg10: memref<1x32x8xbf16, #tpu.memory_space<vmem>>, %arg11: memref<1x8xf32, #tpu.memory_space<vmem>>, %arg12: memref<1x8xf32, #tpu.memory_space<vmem>>, %arg13: memref<1x1x8xbf16, #tpu.memory_space<vmem>>, %arg14: memref<1x16x8xf32, #tpu.memory_space<vmem>>) attributes {dimension_semantics = [#tpu.dimension_semantics<parallel>], iteration_bounds = array<i64: 4>, scalar_prefetch = 0 : i64, scratch_operands = 0 : i64, tpu.core_type = #tpu.core_type<tc>, window_params = [{pipeline_mode = #tpu.pipeline_mode<synchronous>, transform_indices = @transform_0, window_bounds = array<i64: 16, 16>}, {pipeline_mode = #tpu.pipeline_mode<synchronous>, transform_indices = @transform_1, window_bounds = array<i64: 16, 32>}, {pipeline_mode = #tpu.pipeline_mode<synchronous>, transform_indices = @transform_2, window_bounds = array<i64: 16, 32>}, {transform_indices = @transform_3, window_bounds = array<i64: 1, 16, 32>}, {pipeline_mode = #tpu.pipeline_mode<synchronous>, transform_indices = @transform_4, window_bounds = array<i64: 1, 32>}, {pipeline_mode = #tpu.pipeline_mode<synchronous>, transform_indices = @transform_5, window_bounds = array<i64: 1, 32>}, {transform_indices = @transform_6, window_bounds = array<i64: 1, 1, 32>}, {pipeline_mode = #tpu.pipeline_mode<synchronous>, transform_indices = @transform_7, window_bounds = array<i64: 32, 8>}, {pipeline_mode = #tpu.pipeline_mode<synchronous>, transform_indices = @transform_8, window_bounds = array<i64: 32, 8>}, {transform_indices = @transform_9, window_bounds = array<i64: 1, 32, 8>}, {pipeline_mode = #tpu.pipeline_mode<synchronous>, transform_indices = @transform_10, window_bounds = array<i64: 1, 8>}, {pipeline_mode = #tpu.pipeline_mode<synchronous>, transform_indices = @transform_11, window_bounds = array<i64: 1, 8>}, {transform_indices = @transform_12, window_bounds = array<i64: 1, 1, 8>}, {transform_indices = @transform_13, window_bounds = array<i64: 1, 16, 8>}]} {
    %c0 = arith.constant 0 : index
    %c0_0 = arith.constant 0 : index
    %0 = vector.load %arg1[%c0, %c0_0] : memref<16x16xf32, #tpu.memory_space<vmem>>, vector<16x16xf32>
    %c0_1 = arith.constant 0 : index
    %c0_2 = arith.constant 0 : index
    %1 = vector.load %arg2[%c0_1, %c0_2] : memref<16x32xf32, #tpu.memory_space<vmem>>, vector<16x32xf32>
    %c0_3 = arith.constant 0 : index
    %c0_4 = arith.constant 0 : index
    %2 = vector.load %arg3[%c0_3, %c0_4] : memref<16x32xf32, #tpu.memory_space<vmem>>, vector<16x32xf32>
    %cst = arith.constant 5.000000e-01 : f32
    %3 = vector.broadcast %cst : f32 to vector<16x32xf32>
    %4 = arith.mulf %3, %2 : vector<16x32xf32>
    %5 = math.exp %4 : vector<16x32xf32>
    %c0_5 = arith.constant 0 : index
    %c0_6 = arith.constant 0 : index
    %6 = vector.load %arg6[%c0_5, %c0_6] : memref<1x32xf32, #tpu.memory_space<vmem>>, vector<1x32xf32>
    %cst_7 = arith.constant 5.000000e-01 : f32
    %7 = vector.broadcast %cst_7 : f32 to vector<1x32xf32>
    %8 = arith.mulf %7, %6 : vector<1x32xf32>
    %9 = math.exp %8 : vector<1x32xf32>
    %c0_8 = arith.constant 0 : index
    %c0_9 = arith.constant 0 : index
    %c0_10 = arith.constant 0 : index
    %10 = vector.load %arg4[%c0_8, %c0_9, %c0_10] : memref<1x16x32xbf16, #tpu.memory_space<vmem>>, vector<1x16x32xbf16>
    %11 = vector.shape_cast %10 : vector<1x16x32xbf16> to vector<16x32xbf16>
    %12 = arith.extf %11 : vector<16x32xbf16> to vector<16x32xf32>
    %c0_11 = arith.constant 0 : index
    %c0_12 = arith.constant 0 : index
    %c0_13 = arith.constant 0 : index
    %13 = vector.load %arg7[%c0_11, %c0_12, %c0_13] : memref<1x1x32xbf16, #tpu.memory_space<vmem>>, vector<1x1x32xbf16>
    %14 = vector.shape_cast %13 : vector<1x1x32xbf16> to vector<1x32xbf16>
    %15 = arith.extf %14 : vector<1x32xbf16> to vector<1x32xf32>
    %16 = arith.mulf %12, %5 : vector<16x32xf32>
    %17 = arith.addf %1, %16 : vector<16x32xf32>
    %c0_14 = arith.constant 0 : index
    %c0_15 = arith.constant 0 : index
    %18 = vector.load %arg5[%c0_14, %c0_15] : memref<1x32xf32, #tpu.memory_space<vmem>>, vector<1x32xf32>
    %19 = arith.mulf %15, %9 : vector<1x32xf32>
    %20 = arith.addf %18, %19 : vector<1x32xf32>
    %21 = arith.truncf %0 : vector<16x16xf32> to vector<16x16xbf16>
    %22 = arith.truncf %17 : vector<16x32xf32> to vector<16x32xbf16>
    %cst_16 = arith.constant dense<0.000000e+00> : vector<16x32xf32>
    %23 = tpu.matmul %21, %22, %cst_16 {dimension_numbers = #tpu.dot_dimension_numbers<[1], [0], [0], [1], [0, 0, 1, 1], [], []>} : vector<16x16xbf16>, vector<16x32xbf16>, vector<16x32xf32> -> vector<16x32xf32>
    %24 = vector.broadcast %20 : vector<1x32xf32> to vector<16x32xf32>
    %25 = arith.addf %23, %24 : vector<16x32xf32>
    %cst_17 = arith.constant 0.000000e+00 : f32
    %26 = vector.broadcast %cst_17 : f32 to vector<16x32xf32>
    %27 = arith.maximumf %25, %26 : vector<16x32xf32>
    %c0_18 = arith.constant 0 : index
    %c0_19 = arith.constant 0 : index
    %28 = vector.load %arg8[%c0_18, %c0_19] : memref<32x8xf32, #tpu.memory_space<vmem>>, vector<32x8xf32>
    %c0_20 = arith.constant 0 : index
    %c0_21 = arith.constant 0 : index
    %29 = vector.load %arg9[%c0_20, %c0_21] : memref<32x8xf32, #tpu.memory_space<vmem>>, vector<32x8xf32>
    %cst_22 = arith.constant 5.000000e-01 : f32
    %30 = vector.broadcast %cst_22 : f32 to vector<32x8xf32>
    %31 = arith.mulf %30, %29 : vector<32x8xf32>
    %32 = math.exp %31 : vector<32x8xf32>
    %c0_23 = arith.constant 0 : index
    %c0_24 = arith.constant 0 : index
    %33 = vector.load %arg12[%c0_23, %c0_24] : memref<1x8xf32, #tpu.memory_space<vmem>>, vector<1x8xf32>
    %cst_25 = arith.constant 5.000000e-01 : f32
    %34 = vector.broadcast %cst_25 : f32 to vector<1x8xf32>
    %35 = arith.mulf %34, %33 : vector<1x8xf32>
    %36 = math.exp %35 : vector<1x8xf32>
    %c0_26 = arith.constant 0 : index
    %c0_27 = arith.constant 0 : index
    %c0_28 = arith.constant 0 : index
    %37 = vector.load %arg10[%c0_26, %c0_27, %c0_28] : memref<1x32x8xbf16, #tpu.memory_space<vmem>>, vector<1x32x8xbf16>
    %38 = vector.shape_cast %37 : vector<1x32x8xbf16> to vector<32x8xbf16>
    %39 = arith.extf %38 : vector<32x8xbf16> to vector<32x8xf32>
    %c0_29 = arith.constant 0 : index
    %c0_30 = arith.constant 0 : index
    %c0_31 = arith.constant 0 : index
    %40 = vector.load %arg13[%c0_29, %c0_30, %c0_31] : memref<1x1x8xbf16, #tpu.memory_space<vmem>>, vector<1x1x8xbf16>
    %41 = vector.shape_cast %40 : vector<1x1x8xbf16> to vector<1x8xbf16>
    %42 = arith.extf %41 : vector<1x8xbf16> to vector<1x8xf32>
    %43 = arith.mulf %39, %32 : vector<32x8xf32>
    %44 = arith.addf %28, %43 : vector<32x8xf32>
    %c0_32 = arith.constant 0 : index
    %c0_33 = arith.constant 0 : index
    %45 = vector.load %arg11[%c0_32, %c0_33] : memref<1x8xf32, #tpu.memory_space<vmem>>, vector<1x8xf32>
    %46 = arith.mulf %42, %36 : vector<1x8xf32>
    %47 = arith.addf %45, %46 : vector<1x8xf32>
    %48 = arith.truncf %27 : vector<16x32xf32> to vector<16x32xbf16>
    %49 = arith.truncf %44 : vector<32x8xf32> to vector<32x8xbf16>
    %cst_34 = arith.constant dense<0.000000e+00> : vector<16x8xf32>
    %50 = tpu.matmul %48, %49, %cst_34 {dimension_numbers = #tpu.dot_dimension_numbers<[1], [0], [0], [1], [0, 0, 1, 1], [], []>} : vector<16x32xbf16>, vector<32x8xbf16>, vector<16x8xf32> -> vector<16x8xf32>
    %51 = vector.broadcast %47 : vector<1x8xf32> to vector<16x8xf32>
    %52 = arith.addf %50, %51 : vector<16x8xf32>
    %c0_35 = arith.constant 0 : index
    %c0_36 = arith.constant 0 : index
    %c0_37 = arith.constant 0 : index
    %53 = vector.load %arg14[%c0_35, %c0_36, %c0_37] : memref<1x16x8xf32, #tpu.memory_space<vmem>>, vector<1x16x8xf32>
    %54 = vector.shape_cast %53 : vector<1x16x8xf32> to vector<16x8xf32>
    %55 = vector.shape_cast %52 : vector<16x8xf32> to vector<1x16x8xf32>
    tpu.vector_store %arg14[%c0_35, %c0_36, %c0_37], %55 {strides = array<i32>} : memref<1x16x8xf32, #tpu.memory_space<vmem>>, vector<1x16x8xf32>,
    return
  }
  func.func @transform_0(%arg0: i32) -> (i32, i32) {
    %c0_i32 = arith.constant 0 : i32
    %c0_i32_0 = arith.constant 0 : i32
    %c0_i32_1 = arith.constant 0 : i32
    return %c0_i32, %c0_i32_0 : i32, i32
  }
  func.func @transform_1(%arg0: i32) -> (i32, i32) {
    %c0_i32 = arith.constant 0 : i32
    %c0_i32_0 = arith.constant 0 : i32
    %c0_i32_1 = arith.constant 0 : i32
    return %c0_i32, %c0_i32_0 : i32, i32
  }
  func.func @transform_2(%arg0: i32) -> (i32, i32) {
    %c0_i32 = arith.constant 0 : i32
    %c0_i32_0 = arith.constant 0 : i32
    %c0_i32_1 = arith.constant 0 : i32
    return %c0_i32, %c0_i32_0 : i32, i32
  }
  func.func @transform_3(%arg0: i32) -> (i32, i32, i32) {
    %c0_i32 = arith.constant 0 : i32
    %c0_i32_0 = arith.constant 0 : i32
    %c0_i32_1 = arith.constant 0 : i32
    return %arg0, %c0_i32, %c0_i32_0 : i32, i32, i32
  }
  func.func @transform_4(%arg0: i32) -> (i32, i32) {
    %c0_i32 = arith.constant 0 : i32
    %c0_i32_0 = arith.constant 0 : i32
    %c0_i32_1 = arith.constant 0 : i32
    return %c0_i32, %c0_i32_0 : i32, i32
  }
  func.func @transform_5(%arg0: i32) -> (i32, i32) {
    %c0_i32 = arith.constant 0 : i32
    %c0_i32_0 = arith.constant 0 : i32
    %c0_i32_1 = arith.constant 0 : i32
    return %c0_i32, %c0_i32_0 : i32, i32
  }
  func.func @transform_6(%arg0: i32) -> (i32, i32, i32) {
    %c0_i32 = arith.constant 0 : i32
    %c0_i32_0 = arith.constant 0 : i32
    %c0_i32_1 = arith.constant 0 : i32
    return %arg0, %c0_i32, %c0_i32_0 : i32, i32, i32
  }
  func.func @transform_7(%arg0: i32) -> (i32, i32) {
    %c0_i32 = arith.constant 0 : i32
    %c0_i32_0 = arith.constant 0 : i32
    %c0_i32_1 = arith.constant 0 : i32
    return %c0_i32, %c0_i32_0 : i32, i32
  }
  func.func @transform_8(%arg0: i32) -> (i32, i32) {
    %c0_i32 = arith.constant 0 : i32
    %c0_i32_0 = arith.constant 0 : i32
    %c0_i32_1 = arith.constant 0 : i32
    return %c0_i32, %c0_i32_0 : i32, i32
  }
  func.func @transform_9(%arg0: i32) -> (i32, i32, i32) {
    %c0_i32 = arith.constant 0 : i32
    %c0_i32_0 = arith.constant 0 : i32
    %c0_i32_1 = arith.constant 0 : i32
    return %arg0, %c0_i32, %c0_i32_0 : i32, i32, i32
  }
  func.func @transform_10(%arg0: i32) -> (i32, i32) {
    %c0_i32 = arith.constant 0 : i32
    %c0_i32_0 = arith.constant 0 : i32
    %c0_i32_1 = arith.constant 0 : i32
    return %c0_i32, %c0_i32_0 : i32, i32
  }
  func.func @transform_11(%arg0: i32) -> (i32, i32) {
    %c0_i32 = arith.constant 0 : i32
    %c0_i32_0 = arith.constant 0 : i32
    %c0_i32_1 = arith.constant 0 : i32
    return %c0_i32, %c0_i32_0 : i32, i32
  }
  func.func @transform_12(%arg0: i32) -> (i32, i32, i32) {
    %c0_i32 = arith.constant 0 : i32
    %c0_i32_0 = arith.constant 0 : i32
    %c0_i32_1 = arith.constant 0 : i32
    return %arg0, %c0_i32, %c0_i32_0 : i32, i32, i32
  }
  func.func @transform_13(%arg0: i32) -> (i32, i32, i32) {
    %c0_i32 = arith.constant 0 : i32
    %c0_i32_0 = arith.constant 0 : i32
    %c0_i32_1 = arith.constant 0 : i32
    return %arg0, %c0_i32, %c0_i32_0 : i32, i32, i32
  }
}

</mosaic_0001>

<bundles_post_ra>
// kernel: tpu_custom_call.1
= control target key start
LH: loop header
LB: loop body
LE: loop exit
PB: predicated region body
PF: predicated region fallthrough
CT: control target
= control target key end

     0   :  { %s834_s25 = smov 0   ;;  %s924_s0 = inlined_call_operand.vmem [shape: f32[16,16], index: 0, kind: input, shape index: {}]   ;;  %s925_s1 = inlined_call_operand.vmem [shape: f32[16,32], index: 1, kind: input, shape index: {}]   ;;  %s926_s2 = inlined_call_operand.vmem [shape: f32[16,32], index: 2, kind: input, shape index: {}]   ;;  %s927_s3 = inlined_call_operand.vmem [shape: bf16[4,16,32], index: 3, kind: input, shape index: {}]   ;;  %s928_s4 = inlined_call_operand.vmem [shape: f32[1,32], index: 4, kind: input, shape index: {}]   ;;  %s929_s5 = inlined_call_operand.vmem [shape: f32[1,32], index: 5, kind: input, shape index: {}]   ;;  %s930_s6 = inlined_call_operand.vmem [shape: bf16[4,1,32], index: 6, kind: input, shape index: {}]   ;;  %s931_s7 = inlined_call_operand.vmem [shape: f32[32,8], index: 7, kind: input, shape index: {}]   ;;  %s932_s8 = inlined_call_operand.vmem [shape: f32[32,8], index: 8, kind: input, shape index: {}]   ;;  %s933_s9 = inlined_call_operand.vmem [shape: bf16[4,32,8], index: 9, kind: input, shape index: {}]   ;;  %s934_s10 = inlined_call_operand.vmem [shape: f32[1,8], index: 10, kind: input, shape index: {}]   ;;  %s935_s11 = inlined_call_operand.vmem [shape: f32[1,8], index: 11, kind: input, shape index: {}]   ;;  %s936_s12 = inlined_call_operand.vmem [shape: bf16[4,1,8], index: 12, kind: input, shape index: {}]   ;;  %s937_s13 = inlined_call_operand.vmem [shape: f32[4,16,8], index: 13, kind: output, shape index: {}]  }
   0x1 LB: > { %s701_s26 = sadd.s32 4294967295, %s762_s25   ;;  %p705_p0 = scmp.ge.s32.totalorder %s762_s25, 1  ;;  %s762_s25 = sphi %s834_s25, %s23_s25  }
   0x2   : > { %p413_p1 = scmp.lt.s32.totalorder %s762_s25, 5 }
   0x4   : > { %p414_p2 = pnand %p705_p0, %p413_p1 }
   0x5   : > { %p468_p3 = scmp.lt.s32.totalorder (!%p414_p2), %s701_s26, 3 }
   0x6   : > { %417 = sbr.rel (%p414_p2) target bundleno = 310 (0x136), region = 72 }
   0xb   : > { %v494_v0 = vld [vmem:[%s926_s2] sm:$0xff]  ;;  %v495_v1 = vld [vmem:[%s926_s2 + $0x8] sm:$0xff]  ;;  %s939_s26 = smov (!%p468_p3, %s701_s26), 3  ;;  %vm524_vm0 = vcmask 130048   ;;  %v550_v21 = vld [vmem:[%s932_s8 + $0x10] sm:$0xff]  ;;  %vm595_vm1 = vcmask 261120  }
   0xc   : > { %v496_v2 = vmul.f32 0.5, %v494_v0  ;;  %v497_v3 = vmul.f32 0.5, %v495_v1  ;;  %s716_s14 = sshll.u32 %s939_s26, 3  ;;  %v492_v10 = vld [vmem:[%s925_s1] sm:$0xff]  ;;  %v493_v12 = vld [vmem:[%s925_s1 + $0x8] sm:$0xff]  ;;  %v551_v22 = vld [vmem:[%s932_s8 + $0x18] sm:$0xff]  ;;  %s475_s21 = scalar_lea.vmem %s930_s6, %s939_s26 }
   0xd   : > { %s472_s17 = scalar_lea.vmem %s927_s3, %s716_s14  ;;  %v490_v17 = vld [vmem:[%s924_s0] sm:$0xff]  ;;  %v491_v18 = vld [vmem:[%s924_s0 + $0x8] sm:$0xff]  ;;  %v554_v23 = vmul.f32 0.5, %v550_v21  ;;  %v555_v24 = vmul.f32 0.5, %v551_v22  ;;  %s717_s15 = sshll.u32 %s939_s26, 4  ;;  %v546_v39 = vld [vmem:[%s931_s7 + $0x10] sm:$0xff] }
   0xe   : > { %v498_v4 = vmul.f32 1.442695, %v496_v2  ;;  %v500_v5 = vmul.f32 1.442695, %v497_v3  ;;  %v720_v6 = vld [vmem:[%s472_s17] sm:$0xff]   ;;  %v519_v20 = vpack.c.bf16 %v491_v18, %v490_v17  ;;  %v549_v28 = vld [vmem:[%s932_s8 + $0x8] sm:$0xff]  ;;  %s480_s22 = scalar_lea.vmem %s933_s9, %s717_s15  ;;  %s483_s30 = scalar_lea.vmem %s936_s12, %s939_s26 }
   0xf   : > { %v721_v7 = vunpack.c.l.bf16 %v720_v6  ;;  %v722_v8 = vunpack.c.h.bf16 %v720_v6  ;;  %v560_v25 = vmul.f32 1.442695, %v554_v23  ;;  %v562_v26 = vmul.f32 1.442695, %v555_v24  ;;  %v548_v27 = vld [vmem:[%s932_s8] sm:$0xff]  ;;  %v731_v33 = vld [vmem:[%s480_s22 + $0x8] sm:$0xff]   ;;  %s488_s19 = scalar_lea.vmem %s937_s13, %s717_s15 }
  0x10   : > { %740 = vpow2.f32 %v498_v4  ;;  %v552_v29 = vmul.f32 0.5, %v548_v27  ;;  %v553_v30 = vmul.f32 0.5, %v549_v28  ;;  %v729_v34 = vunpack.c.l.bf16 %v731_v33  ;;  %v547_v40 = vld [vmem:[%s931_s7 + $0x18] sm:$0xff]  ;;  %v724_v42 = vld [vmem:[%s480_s22] sm:$0xff]   ;;  %v545_v53 = vld [vmem:[%s931_s7 + $0x8] sm:$0xff] }
  0x11   : > { %742 = vpow2.f32 %v500_v5  ;;  %v730_v35 = vunpack.c.h.bf16 %v731_v33  ;;  %v725_v44 = vunpack.c.l.bf16 %v724_v42  ;;  %v726_v45 = vunpack.c.h.bf16 %v724_v42  ;;  %v502_v50 = vld [vmem:[%s929_s5] sm:$0x1] }
  0x12   : > { %744 = vpow2.f32 %v560_v25  ;;  %v556_v31 = vmul.f32 1.442695, %v552_v29  ;;  %v558_v32 = vmul.f32 1.442695, %v553_v30  ;;  %v544_v52 = vld [vmem:[%s931_s7] sm:$0xff]  ;;  %v503_v57 = vmul.f32 0.5, %v502_v50 }
  0x13   : > { %746 = vpow2.f32 %v562_v26  ;;  %v510_v60 = vld [vmem:[%s475_s21] sm:$0x1]  ;;  %vm613_vm2 = vcmask 64512  }
  0x14   : > { %748 = vpow2.f32 %v556_v31  ;;  %v504_v59 = vmul.f32 1.442695, %v503_v57  ;;  %v511_v61 = vunpack.c.l.bf16 %v510_v60  ;;  %v516_v0 = vld [vmem:[%s928_s4] sm:$0x1] }
  0x15   : > { %750 = vpow2.f32 %v558_v32  ;;  %v586_v17 = vld [vmem:[%s934_s10] sm:$0x1] }
  0x16   : > { %v741_v9 = vpop.eup %740  ;;  %752 = vpow2.f32 %v504_v59 }
  0x17   : > { %v743_v11 = vpop.eup %742  ;;  %v512_v13 = vmul.f32 %v741_v9, %v721_v7 }
  0x18   : > { %v513_v14 = vmul.f32 %v743_v11, %v722_v8  ;;  %v745_v36 = vpop.eup %744 }
  0x19   : > { %v514_v15 = vadd.f32 %v512_v13, %v492_v10  ;;  %v747_v37 = vpop.eup %746  ;;  %v580_v38 = vmul.f32 %v745_v36, %v729_v34  ;;  %v564_v10 = vld [vmem:[%s935_s11] sm:$0x1] }
  0x1a   : > { %v515_v16 = vadd.f32 %v513_v14, %v493_v12  ;;  %v581_v41 = vmul.f32 %v747_v37, %v730_v35  ;;  %v749_v46 = vpop.eup %748  ;;  %v565_v11 = vmul.f32 0.5, %v564_v10  ;;  %v576_v13 = vld [vmem:[%s483_s30] sm:$0x1] }
  0x1b   : > { %v584_v43 = vadd.f32 %v580_v38, %v546_v39  ;;  %v751_v48 = vpop.eup %750  ;;  %v578_v49 = vmul.f32 %v749_v46, %v725_v44  ;;  %v577_v14 = vunpack.c.l.bf16 %v576_v13 }
  0x1c   : > { %v520_v19 = vpack.c.bf16 %v515_v16, %v514_v15  ;;  %v585_v47 = vadd.f32 %v581_v41, %v547_v40  ;;  %v579_v54 = vmul.f32 %v751_v48, %v726_v45  ;;  %v753_v62 = vpop.eup %752  ;;  %v566_v12 = vmul.f32 1.442695, %v565_v11 }
  0x1d   : > { %v582_v55 = vadd.f32 %v578_v49, %v544_v52  ;;  %v517_v63 = vmul.f32 %v753_v62, %v511_v61 }
  0x1e   : > { %535 = vmatpush.bf16.msra.mxu0 %v520_v19  ;;  %v591_v51 = vpack.c.bf16 %v585_v47, %v584_v43  ;;  %v583_v56 = vadd.f32 %v579_v54, %v545_v53  ;;  %754 = vpow2.f32 %v566_v12 }
  0x1f   : > { %v518_v1 = vadd.f32 %v517_v63, %v516_v0 }
  0x20   : > { %605 = vmatpush.bf16.msra.mxu1 %v591_v51  ;;  %v590_v58 = vpack.c.bf16 %v583_v56, %v582_v55 }
  0x21   : > { %712 = vmatmul.msk.bf16.vlgmr.msra.gmra.mxu0 %vm524_vm0, %v519_v20  ;;  %v522_v3 = vperm.slane %v518_v1, 0 }
  0x24   : > { %606 = vmatpush.bf16.msra.mxu1 %v590_v58  ;;  %v755_v15 = vpop.eup %754 }
  0x25   : > { %v587_v16 = vmul.f32 %v755_v15, %v577_v14 }
  0x27   : > { %v588_v18 = vadd.f32 %v587_v16, %v586_v17 }
  0x29   : > { %v593_v19 = vperm.slane %v588_v18, 0 }
  0x9e   : > { %v537_v2 = vpop.f32.mrf.mxu0 }
  0x9f   : > { %v538_v4 = vadd.f32 %v537_v2, %v522_v3 }
  0xa1   : > { %v542_v7 = vmax.f32 %v538_v4, 0.0 }
  0xa6   : > { %v539_v5 = vpop.f32.mrf.mxu0 }
  0xa7   : > { %v540_v6 = vadd.f32 %v539_v5, %v522_v3 }
  0xa9   : > { %v543_v8 = vmax.f32 %v540_v6, 0.0 }
  0xab   : > { %v589_v9 = vpack.c.bf16 %v543_v8, %v542_v7 }
  0xad   : > { %713 = vmatmul.msk.bf16.vlgmr.msra.gmra.mxu1 %vm595_vm1, %v589_v9 }
 0x12a   : > { %v608_v20 = vpop.f32.mrf.mxu1 }
 0x12b   : > { %v609_v21 = vadd.f32 %v608_v20, %v593_v19 }
 0x12d   : > { %614 = vst.msk [vmem:[%s488_s19] sm:$0xff] %vm613_vm2, %v609_v21 }
 0x132   : > { %v610_v22 = vpop.f32.mrf.mxu1 }
 0x133   : > { %v611_v23 = vadd.f32 %v610_v22, %v593_v19 }
 0x135   : > { %615 = vst.msk [vmem:[%s488_s19 + $0x8] sm:$0xff] %vm613_vm2, %v611_v23 }
 0x136 PF: > { %s23_s25 = sadd.s32 1, %s762_s25  }
 0x137   : > { %p20_p4 = scmp.ge.s32.totalorder %s23_s25, 6  }
 0x139   :  { %22 = sbr.rel (!%p20_p4) target bundleno = 1 (0x1), region = 111 }

</bundles_post_ra>
